<compile_context>
chip_gen: v7x
topology: tpu7x:2x2x1
jax: 0.10.0
libtpu: 0.0.40
codegen_flags: <defaults>
</compile_context>

<pallas_src>
import functools

import jax
import jax.numpy as jnp
from jax.experimental import pallas as pl
from jax.experimental.pallas import tpu as pltpu


def _round_up(n, m):
    return ((n + m - 1) // m) * m


def policy_kernel(x_ref, w1_ref, b1_ref, w2_ref, b2_ref, out_ref):
    # x is fully VMEM-resident; slice this grid step's batch tile in-kernel.
    TB = out_ref.shape[0]
    S = x_ref.shape[1]
    start = pl.multiple_of(pl.program_id(0) * TB, TB)   # TB is a multiple of 8
    x = x_ref[pl.ds(start, TB), :]                      # (TB, S) f32

    # hidden = relu(x @ W1 + b1); K = S = 4 is tiny -> unrolled VPU
    # broadcast-FMAs on the lane-dense W1 rows instead of an under-fed MXU dot.
    h = x[:, 0:1] * w1_ref[0:1, :] + b1_ref[...]        # (TB, H)
    for k in range(1, S):                               # unrolled at trace time
        h = h + x[:, k:k + 1] * w1_ref[k:k + 1, :]
    h = jnp.maximum(h, 0.0)

    # logits = h @ W2_pad + b2_pad  (K = 128 -> MXU; full 128-lane output slab)
    logits = jnp.dot(h, w2_ref[...], preferred_element_type=jnp.float32)
    logits = logits + b2_ref[...]                       # pad lanes get -1e30

    # Numerically stable softmax over the action axis; pad lanes give exp == 0
    # (the row max always comes from a real lane, so exp(-1e30 - m) underflows).
    m = jnp.max(logits, axis=-1, keepdims=True)
    e = jnp.exp(logits - m)
    denom = jnp.sum(e, axis=-1, keepdims=True)          # >= 1 always
    r = pl.reciprocal(denom, approx=True)               # EUP vrcp (free slot)
    r = r * (2.0 - denom * r)                           # Newton step -> f32 accuracy
    out_ref[...] = (e * r).astype(out_ref.dtype)


def prepare_params(w1, b1, w2, b2):
    """One-time parameter prep (hoisted out of the per-call forward path).

    Pads W2/b2 out to a multiple of 128 output lanes so the kernel writes a
    lane-dense output slab (unmasked vst).  Pad biases are -1e30 so the padded
    logits contribute exactly 0 to the softmax normalization.

    Weight layout contract: W1 (S, H) and W2 (H, A) are stored (in, out), i.e.
    the transpose of PyTorch nn.Linear's weight.
    """
    H, A = w2.shape
    AP = _round_up(A, 128)
    w2p = jnp.zeros((H, AP), w2.dtype).at[:, :A].set(w2)
    b2p = jnp.full((1, AP), -1e30, b2.dtype).at[:, :A].set(b2)
    return w1, b1, w2p, b2p


@functools.partial(jax.jit, static_argnames=("actions", "block_b", "num_cores"))
def policy_forward(x, w1, b1, w2p, b2p, *, actions, block_b=1024, num_cores=None):
    """probs = softmax(relu(x @ W1 + b1) @ W2 + b2, axis=1).

    x: (B, S) f32; w1: (S, H); b1: (1, H); w2p: (H, AP); b2p: (1, AP) from
    prepare_params().  `actions` is the true (un-padded) action count A.
    """
    B, S = x.shape
    H = w1.shape[1]
    AP = w2p.shape[1]

    # --- Batch tiling -------------------------------------------------------
    # Grid = number of batch tiles.  We want: (a) tiles as large as possible
    # (per-step overhead amortized, big DMAs), but (b) at least 2 tiles when
    # the batch is large enough so the "parallel" axis can shard across both
    # v7x TensorCores.  On 1-TC chips (v5e/v6e) pass num_cores=1 to pallas the
    # whole batch as a single tile.
    BP8 = _round_up(B, 8)
    if num_cores is None:
        num_cores = 2 if BP8 >= 256 else 1
    nt = max(pl.cdiv(BP8, block_b), num_cores)
    TB = _round_up(pl.cdiv(BP8, nt), 8)                 # rows per tile, mult of 8
    BP = TB * nt                                        # padded batch (<= B + 8*nt)
    xp = x if BP == B else jnp.zeros((BP, S), x.dtype).at[:B, :].set(x)

    # At these sizes nothing approaches the scoped-VMEM default on any chip
    # (v5e 16 MiB included), so vmem_limit_bytes is left at its default.
    cost = pl.CostEstimate(
        flops=2 * BP * H * (S + AP),
        transcendentals=BP * (AP + 1),                  # exp + reciprocal
        bytes_accessed=4 * (BP * S + BP * AP + S * H + H + H * AP + AP),
    )

    out = pl.pallas_call(
        policy_kernel,
        out_shape=jax.ShapeDtypeStruct((BP, AP), jnp.float32),
        grid_spec=pl.GridSpec(
            grid=(nt,),
            in_specs=[
                # x: whole array VMEM-resident (constant index_map -> one DMA);
                # the per-tile slice happens in-kernel via pl.ds.
                pl.BlockSpec((BP, S), lambda i: (0, 0)),
                # Weights/biases: constant index_map -> VMEM-resident, no
                # per-step DMA.  (pl.Buffered(1) would shave ~66 KB of double
                # buffering but is skipped as a negligible, riskier micro-opt.)
                pl.BlockSpec((S, H), lambda i: (0, 0)),
                pl.BlockSpec((1, H), lambda i: (0, 0)),
                pl.BlockSpec((H, AP), lambda i: (0, 0)),
                pl.BlockSpec((1, AP), lambda i: (0, 0)),
            ],
            out_specs=pl.BlockSpec((TB, AP), lambda i: (i, 0)),
        ),
        compiler_params=pltpu.CompilerParams(
            dimension_semantics=("parallel",),  # shard batch tiles across TCs (v7x)
        ),
        cost_estimate=cost,
    )(xp, w1, b1, w2p, b2p)

    return out[:B, :actions]


if __name__ == "__main__":
    # state_space=4, hidden=128 (fixed by the module), action_space=6;
    # batch large enough to exercise the 2-tile batch-parallel grid.
    B, S, H, A = 256, 4, 128, 6

    key = jax.random.PRNGKey(0)
    kx, k1, k2, k3, k4 = jax.random.split(key, 5)

    x = jax.random.normal(kx, (B, S), dtype=jnp.float32)

    # nn.Linear-style uniform(-1/sqrt(fan_in), 1/sqrt(fan_in)) init.
    lim1 = 1.0 / jnp.sqrt(jnp.float32(S))
    lim2 = 1.0 / jnp.sqrt(jnp.float32(H))
    w1 = jax.random.uniform(k1, (S, H), jnp.float32, -lim1, lim1)   # == W1_pt.T
    b1 = jax.random.uniform(k2, (1, H), jnp.float32, -lim1, lim1)
    w2 = jax.random.uniform(k3, (H, A), jnp.float32, -lim2, lim2)   # == W2_pt.T
    b2 = jax.random.uniform(k4, (1, A), jnp.float32, -lim2, lim2)

    # One-time weight prep (lane-padding) -- hoisted out of the forward call.
    w1p, b1p, w2p, b2p = prepare_params(w1, b1, w2, b2)
    w1p, b1p, w2p, b2p = jax.block_until_ready((w1p, b1p, w2p, b2p))

    probs = policy_forward(x, w1p, b1p, w2p, b2p, actions=A)
    probs = jax.block_until_ready(probs)

    # Plain-JAX reference of the module's forward pass.
    h_ref = jnp.maximum(x @ w1 + b1, 0.0)
    ref = jax.nn.softmax(h_ref @ w2 + b2, axis=1)

    assert probs.shape == (B, A)
    assert jnp.allclose(probs, ref, atol=1e-5, rtol=1e-5)
    assert jnp.allclose(jnp.sum(probs, axis=1), 1.0, atol=1e-5)

    # TODO(synk): get_action's Categorical sampling / log_prob is host-side RL
    # plumbing, not part of the module's forward pass, so it is not kernelized.

    print("KERNEL_OK")
</pallas_src>

<mosaic_0001>
module attributes {stable_mosaic.version = 11 : i64} {
  func.func @policy_kernel(%arg0: i32, %arg1: memref<256x4xf32, #tpu.memory_space<vmem>>, %arg2: memref<4x128xf32, #tpu.memory_space<vmem>>, %arg3: memref<1x128xf32, #tpu.memory_space<vmem>>, %arg4: memref<128x128xf32, #tpu.memory_space<vmem>>, %arg5: memref<1x128xf32, #tpu.memory_space<vmem>>, %arg6: memref<128x128xf32, #tpu.memory_space<vmem>>) attributes {dimension_semantics = [#tpu.dimension_semantics<parallel>], iteration_bounds = array<i64: 2>, scalar_prefetch = 0 : i64, scratch_operands = 0 : i64, tpu.core_type = #tpu.core_type<tc>, window_params = [{pipeline_mode = #tpu.pipeline_mode<synchronous>, transform_indices = @transform_0, window_bounds = array<i64: 256, 4>}, {pipeline_mode = #tpu.pipeline_mode<synchronous>, transform_indices = @transform_1, window_bounds = array<i64: 4, 128>}, {pipeline_mode = #tpu.pipeline_mode<synchronous>, transform_indices = @transform_2, window_bounds = array<i64: 1, 128>}, {pipeline_mode = #tpu.pipeline_mode<synchronous>, transform_indices = @transform_3, window_bounds = array<i64: 128, 128>}, {pipeline_mode = #tpu.pipeline_mode<synchronous>, transform_indices = @transform_4, window_bounds = array<i64: 1, 128>}, {transform_indices = @transform_5, window_bounds = array<i64: 128, 128>}]} {
    %c128_i32 = arith.constant 128 : i32
    %0 = arith.muli %arg0, %c128_i32 : i32
    %1 = tpu.assume_multiple %0, 128 : i32
    %2 = arith.index_cast %1 : i32 to index
    %c0 = arith.constant 0 : index
    %3 = vector.load %arg1[%2, %c0] : memref<256x4xf32, #tpu.memory_space<vmem>>, vector<128x4xf32>
    %4 = vector.extract_strided_slice %3 {offsets = [0, 0], sizes = [128, 1], strides = [1, 1]} : vector<128x4xf32> to vector<128x1xf32>
    %c0_0 = arith.constant 0 : index
    %c0_1 = arith.constant 0 : index
    %5 = vector.load %arg2[%c0_0, %c0_1] : memref<4x128xf32, #tpu.memory_space<vmem>>, vector<1x128xf32>
    %6 = vector.broadcast %4 : vector<128x1xf32> to vector<128x128xf32>
    %7 = vector.broadcast %5 : vector<1x128xf32> to vector<128x128xf32>
    %8 = arith.mulf %6, %7 : vector<128x128xf32>
    %c0_2 = arith.constant 0 : index
    %c0_3 = arith.constant 0 : index
    %9 = vector.load %arg3[%c0_2, %c0_3] : memref<1x128xf32, #tpu.memory_space<vmem>>, vector<1x128xf32>
    %10 = vector.broadcast %9 : vector<1x128xf32> to vector<128x128xf32>
    %11 = arith.addf %8, %10 : vector<128x128xf32>
    %12 = vector.extract_strided_slice %3 {offsets = [0, 1], sizes = [128, 1], strides = [1, 1]} : vector<128x4xf32> to vector<128x1xf32>
    %c1 = arith.constant 1 : index
    %c0_4 = arith.constant 0 : index
    %13 = vector.load %arg2[%c1, %c0_4] : memref<4x128xf32, #tpu.memory_space<vmem>>, vector<1x128xf32>
    %14 = vector.broadcast %12 : vector<128x1xf32> to vector<128x128xf32>
    %15 = vector.broadcast %13 : vector<1x128xf32> to vector<128x128xf32>
    %16 = arith.mulf %14, %15 : vector<128x128xf32>
    %17 = arith.addf %11, %16 : vector<128x128xf32>
    %18 = vector.extract_strided_slice %3 {offsets = [0, 2], sizes = [128, 1], strides = [1, 1]} : vector<128x4xf32> to vector<128x1xf32>
    %c2 = arith.constant 2 : index
    %c0_5 = arith.constant 0 : index
    %19 = vector.load %arg2[%c2, %c0_5] : memref<4x128xf32, #tpu.memory_space<vmem>>, vector<1x128xf32>
    %20 = vector.broadcast %18 : vector<128x1xf32> to vector<128x128xf32>
    %21 = vector.broadcast %19 : vector<1x128xf32> to vector<128x128xf32>
    %22 = arith.mulf %20, %21 : vector<128x128xf32>
    %23 = arith.addf %17, %22 : vector<128x128xf32>
    %24 = vector.extract_strided_slice %3 {offsets = [0, 3], sizes = [128, 1], strides = [1, 1]} : vector<128x4xf32> to vector<128x1xf32>
    %c3 = arith.constant 3 : index
    %c0_6 = arith.constant 0 : index
    %25 = vector.load %arg2[%c3, %c0_6] : memref<4x128xf32, #tpu.memory_space<vmem>>, vector<1x128xf32>
    %26 = vector.broadcast %24 : vector<128x1xf32> to vector<128x128xf32>
    %27 = vector.broadcast %25 : vector<1x128xf32> to vector<128x128xf32>
    %28 = arith.mulf %26, %27 : vector<128x128xf32>
    %29 = arith.addf %23, %28 : vector<128x128xf32>
    %cst = arith.constant 0.000000e+00 : f32
    %30 = vector.broadcast %cst : f32 to vector<128x128xf32>
    %31 = arith.maximumf %29, %30 : vector<128x128xf32>
    %c0_7 = arith.constant 0 : index
    %c0_8 = arith.constant 0 : index
    %32 = vector.load %arg4[%c0_7, %c0_8] : memref<128x128xf32, #tpu.memory_space<vmem>>, vector<128x128xf32>
    %cst_9 = arith.constant dense<0.000000e+00> : vector<128x128xf32>
    %33 = tpu.matmul %31, %32, %cst_9 {dimension_numbers = #tpu.dot_dimension_numbers<[1], [0], [0], [1], [0, 0, 1, 1], [], []>} : vector<128x128xf32>, vector<128x128xf32>, vector<128x128xf32> -> vector<128x128xf32>
    %c0_10 = arith.constant 0 : index
    %c0_11 = arith.constant 0 : index
    %34 = vector.load %arg5[%c0_10, %c0_11] : memref<1x128xf32, #tpu.memory_space<vmem>>, vector<1x128xf32>
    %35 = vector.broadcast %34 : vector<1x128xf32> to vector<128x128xf32>
    %36 = arith.addf %33, %35 : vector<128x128xf32>
    %cst_12 = arith.constant dense<0xFF800000> : vector<128xf32>
    %37 = vector.multi_reduction <maximumf>, %36, %cst_12 [1] : vector<128x128xf32> to vector<128xf32>
    %38 = vector.shape_cast %37 : vector<128xf32> to vector<128x1xf32>
    %39 = vector.broadcast %38 : vector<128x1xf32> to vector<128x128xf32>
    %40 = arith.subf %36, %39 : vector<128x128xf32>
    %41 = math.exp %40 : vector<128x128xf32>
    %cst_13 = arith.constant dense<0.000000e+00> : vector<128xf32>
    %42 = vector.multi_reduction <add>, %41, %cst_13 [1] : vector<128x128xf32> to vector<128xf32>
    %43 = vector.shape_cast %42 : vector<128xf32> to vector<128x1xf32>
    %44 = tpu.reciprocal %43 {approx = true} : vector<128x1xf32> -> vector<128x1xf32>
    %45 = arith.mulf %43, %44 : vector<128x1xf32>
    %cst_14 = arith.constant 2.000000e+00 : f32
    %46 = vector.broadcast %cst_14 : f32 to vector<128x1xf32>
    %47 = arith.subf %46, %45 : vector<128x1xf32>
    %48 = arith.mulf %44, %47 : vector<128x1xf32>
    %49 = vector.broadcast %48 : vector<128x1xf32> to vector<128x128xf32>
    %50 = arith.mulf %41, %49 : vector<128x128xf32>
    %c0_15 = arith.constant 0 : index
    %c0_16 = arith.constant 0 : index
    %51 = vector.load %arg6[%c0_15, %c0_16] : memref<128x128xf32, #tpu.memory_space<vmem>>, vector<128x128xf32>
    tpu.vector_store %arg6[%c0_15, %c0_16], %50 {strides = array<i32>} : memref<128x128xf32, #tpu.memory_space<vmem>>, vector<128x128xf32>,
    return
  }
  func.func @transform_0(%arg0: i32) -> (i32, i32) {
    %c0_i32 = arith.constant 0 : i32
    %c0_i32_0 = arith.constant 0 : i32
    %c0_i32_1 = arith.constant 0 : i32
    return %c0_i32, %c0_i32_0 : i32, i32
  }
  func.func @transform_1(%arg0: i32) -> (i32, i32) {
    %c0_i32 = arith.constant 0 : i32
    %c0_i32_0 = arith.constant 0 : i32
    %c0_i32_1 = arith.constant 0 : i32
    return %c0_i32, %c0_i32_0 : i32, i32
  }
  func.func @transform_2(%arg0: i32) -> (i32, i32) {
    %c0_i32 = arith.constant 0 : i32
    %c0_i32_0 = arith.constant 0 : i32
    %c0_i32_1 = arith.constant 0 : i32
    return %c0_i32, %c0_i32_0 : i32, i32
  }
  func.func @transform_3(%arg0: i32) -> (i32, i32) {
    %c0_i32 = arith.constant 0 : i32
    %c0_i32_0 = arith.constant 0 : i32
    %c0_i32_1 = arith.constant 0 : i32
    return %c0_i32, %c0_i32_0 : i32, i32
  }
  func.func @transform_4(%arg0: i32) -> (i32, i32) {
    %c0_i32 = arith.constant 0 : i32
    %c0_i32_0 = arith.constant 0 : i32
    %c0_i32_1 = arith.constant 0 : i32
    return %c0_i32, %c0_i32_0 : i32, i32
  }
  func.func @transform_5(%arg0: i32) -> (i32, i32) {
    %c0_i32 = arith.constant 0 : i32
    %c0_i32_0 = arith.constant 0 : i32
    return %arg0, %c0_i32 : i32, i32
  }
}

</mosaic_0001>

<bundles_post_ra>
// kernel: policy_forward.1
= control target key start
LH: loop header
LB: loop body
LE: loop exit
PB: predicated region body
PF: predicated region fallthrough
CT: control target
= control target key end

     0   :  { %s1390_s18 = smov 0   ;;  %s1859_s0 = inlined_call_operand.vmem [shape: f32[256,4], index: 0, kind: input, shape index: {}]   ;;  %s1860_s1 = inlined_call_operand.vmem [shape: f32[4,128], index: 1, kind: input, shape index: {}]   ;;  %s1861_s2 = inlined_call_operand.vmem [shape: f32[1,128], index: 2, kind: input, shape index: {}]   ;;  %s1862_s3 = inlined_call_operand.vmem [shape: f32[128,128], index: 3, kind: input, shape index: {}]   ;;  %s1863_s4 = inlined_call_operand.vmem [shape: f32[1,128], index: 4, kind: input, shape index: {}]   ;;  %s1864_s5 = inlined_call_operand.vmem [shape: f32[256,128], index: 5, kind: output, shape index: {}]  }
   0x1 LB: > { %s1089_s19 = sadd.s32 4294967295, %s1354_s18   ;;  %p1092_p0 = scmp.ge.s32.totalorder %s1354_s18, 1  ;;  %s1354_s18 = sphi %s1390_s18, %s15_s18  }
   0x2   : > { %p177_p1 = scmp.lt.s32.totalorder %s1354_s18, 3 }
   0x4   : > { %p178_p2 = pnand %p1092_p0, %p177_p1 }
   0x5   : > { %s1095_s20 = sshll.u32 (!%p178_p2), %s1089_s19, 7  ;;  %v1356_v0 = vmov (!%p178_p2), 0   ;;  %v1357_v6 = vmov (!%p178_p2), 1   ;;  %v1358_v12 = vmov (!%p178_p2), 2   ;;  %v667_v15 = vld [vmem:[%s1862_s3] sm:$0xff] (!%p178_p2)  ;;  %v668_v16 = vld [vmem:[%s1862_s3 + $0x8] sm:$0xff] (!%p178_p2) }
   0x6   : > { %181 = sbr.rel (%p178_p2) target bundleno = 859 (0x35b), region = 40  ;;  %1253 = vset.pattern.permute.xlu1 (!%p178_p2), %v1356_v0  ;;  %1252 = vset.pattern.permute.xlu0 (!%p178_p2), %v1356_v0  ;;  %s1405_s23 = scalar_lea.vmem (!%p178_p2), %s1859_s0, %s1095_s20  ;;  %v1192_v17 = vpack.c.bf16 (!%p178_p2), %v668_v16, %v667_v15  ;;  %v669_v18 = vld [vmem:[%s1862_s3 + $0x10] sm:$0xff] (!%p178_p2)  ;;  %v670_v19 = vld [vmem:[%s1862_s3 + $0x18] sm:$0xff] (!%p178_p2)  ;;  %v671_v21 = vld [vmem:[%s1862_s3 + $0x20] sm:$0xff] (!%p178_p2)  ;;  %v1359_v27 = vmov (!%p178_p2), 3  }
   0x7   : > { %v1408_v1 = vld [vmem:[%s1405_s23 + $0x8] sm:$0xff] (!%p178_p2)  ;;  %v1411_v2 = vld [vmem:[%s1405_s23] sm:$0xff] (!%p178_p2)  ;;  %v1424_v5 = vld [vmem:[%s1405_s23 + $0x50] sm:$0xff] (!%p178_p2)  ;;  %v1196_v20 = vpack.c.bf16 (!%p178_p2), %v670_v19, %v669_v18  ;;  %s1093_s22 = sshll.u32 (!%p178_p2), %s1089_s19, 4 }
   0x8   : > { %232 = vperm.xlu1 (!%p178_p2), %1253, %v1408_v1   ;;  %227 = vperm.xlu0 (!%p178_p2), %1252, %v1411_v2   ;;  %v1416_v3 = vld [vmem:[%s1405_s23 + $0x48] sm:$0xff] (!%p178_p2)  ;;  %v1419_v4 = vld [vmem:[%s1405_s23 + $0x40] sm:$0xff] (!%p178_p2)  ;;  %v1430_v7 = vld [vmem:[%s1405_s23 + $0x18] sm:$0xff] (!%p178_p2)  ;;  %p201_p3 = scmp.lt.s32.totalorder (!%p178_p2), %s1093_s22, 31 }
   0x9   : > { %v1435_v8 = vld [vmem:[%s1405_s23 + $0x60] sm:$0xff] (!%p178_p2)  ;;  %v1438_v9 = vld [vmem:[%s1405_s23 + $0x10] sm:$0xff] (!%p178_p2)  ;;  %v1443_v10 = vld [vmem:[%s1405_s23 + $0x28] sm:$0xff] (!%p178_p2)  ;;  %1224 = vmatprep.subr.bf16.mxu1 (!%p178_p2), %v1192_v17  ;;  %1193 = vmatprep.subr.bf16.mxu0 (!%p178_p2), %v1192_v17 }
   0xa   : > { %v1448_v11 = vld [vmem:[%s1405_s23 + $0x70] sm:$0xff] (!%p178_p2)  ;;  %v1454_v13 = vld [vmem:[%s1405_s23 + $0x38] sm:$0xff] (!%p178_p2)  ;;  %1232 = vmatpush3.bf16.msra.mxu1 (!%p178_p2), %v1192_v17  ;;  %1195 = vmatpush3.bf16.msra.mxu0 (!%p178_p2), %v1192_v17  ;;  %v672_v22 = vld [vmem:[%s1862_s3 + $0x28] sm:$0xff] (!%p178_p2) }
   0xb   : > { %v1459_v14 = vld [vmem:[%s1405_s23 + $0x58] sm:$0xff] (!%p178_p2)  ;;  %1225 = vmatprep.subr.bf16.mxu1 (!%p178_p2), %v1196_v20  ;;  %1197 = vmatprep.subr.bf16.mxu0 (!%p178_p2), %v1196_v20  ;;  %v1200_v23 = vpack.c.bf16 (!%p178_p2), %v672_v22, %v671_v21  ;;  %v673_v24 = vld [vmem:[%s1862_s3 + $0x30] sm:$0xff] (!%p178_p2)  ;;  %v675_v28 = vld [vmem:[%s1862_s3 + $0x40] sm:$0xff] (!%p178_p2) }
   0xc   : > { %272 = vperm.xlu1 (!%p178_p2), %1253, %v1416_v3   ;;  %267 = vperm.xlu0 (!%p178_p2), %1252, %v1419_v4   ;;  %v674_v25 = vld [vmem:[%s1862_s3 + $0x38] sm:$0xff] (!%p178_p2)  ;;  %v676_v29 = vld [vmem:[%s1862_s3 + $0x48] sm:$0xff] (!%p178_p2)  ;;  %v677_v31 = vld [vmem:[%s1862_s3 + $0x50] sm:$0xff] (!%p178_p2) }
   0xd   : > { %v1204_v26 = vpack.c.bf16 %v674_v25, %v673_v24  ;;  %v1208_v30 = vpack.c.bf16 %v676_v29, %v675_v28  ;;  %v678_v32 = vld [vmem:[%s1862_s3 + $0x58] sm:$0xff]  ;;  %v679_v34 = vld [vmem:[%s1862_s3 + $0x60] sm:$0xff]  ;;  %v680_v35 = vld [vmem:[%s1862_s3 + $0x68] sm:$0xff]  ;;  %s1866_s22 = smov (!%p201_p3, %s1093_s22), 31 }
   0xe   : > { %1233 = vmatpush3.bf16.msra.mxu1 %v1196_v20  ;;  %1199 = vmatpush3.bf16.msra.mxu0 %v1196_v20  ;;  %v1212_v33 = vpack.c.bf16 %v678_v32, %v677_v31  ;;  %v1216_v36 = vpack.c.bf16 %v680_v35, %v679_v34  ;;  %v681_v37 = vld [vmem:[%s1862_s3 + $0x70] sm:$0xff]  ;;  %v682_v38 = vld [vmem:[%s1862_s3 + $0x78] sm:$0xff]  ;;  %v212_v40 = vld [vmem:[%s1405_s23 + $0x20] sm:$0xff]  ;;  %s1094_s24 = sshll.u32 %s1866_s22, 3 }
   0xf   : > { %1226 = vmatprep.subr.bf16.mxu1 %v1200_v23  ;;  %1201 = vmatprep.subr.bf16.mxu0 %v1200_v23  ;;  %v1220_v39 = vpack.c.bf16 %v682_v38, %v681_v37  ;;  %v221_v41 = vld [vmem:[%s1405_s23 + $0x68] sm:$0xff]  ;;  %v214_v42 = vld [vmem:[%s1405_s23 + $0x30] sm:$0xff]  ;;  %v223_v43 = vld [vmem:[%s1405_s23 + $0x78] sm:$0xff]  ;;  %s1822_s26 = scalar_lea.vmem %s1864_s5, %s1094_s24 }
  0x10   : > { %1254 = vset.pattern.permute.xlu1 %v1357_v6  ;;  %277 = vperm.xlu0 %1252, %v1424_v5   ;;  %v1584_v61 = vld [vmem:[%s1860_s1] ss:$0 sm:$0xff] }
  0x11   : > { %382 = vperm.xlu1 %1254, %v1419_v4  }
  0x12   : > { %1234 = vmatpush3.bf16.msra.mxu1 %v1200_v23  ;;  %1203 = vmatpush3.bf16.msra.mxu0 %v1200_v23 }
  0x13   : > { %1227 = vmatprep.subr.bf16.mxu1 %v1204_v26  ;;  %1205 = vmatprep.subr.bf16.mxu0 %v1204_v26 }
  0x14   : > { %242 = vperm.xlu0 %1252, %v1430_v7  }
  0x15   : > { %354 = vperm.xlu1 %1254, %v1408_v1  }
  0x16   : > { %1235 = vmatpush3.bf16.msra.mxu1 %v1204_v26  ;;  %1207 = vmatpush3.bf16.msra.mxu0 %v1204_v26 }
  0x17   : > { %1228 = vmatprep.subr.bf16.mxu1 %v1208_v30  ;;  %1209 = vmatprep.subr.bf16.mxu0 %v1208_v30 }
  0x18   : > { %287 = vperm.xlu0 %1252, %v1435_v8  }
  0x19   : > { %1255 = vset.pattern.permute.xlu1 %v1356_v0 }
  0x1a   : > { %237 = vperm.xlu1 %1255, %v1438_v9   ;;  %1236 = vmatpush3.bf16.msra.mxu1 %v1208_v30 }
  0x1b   : > { %1211 = vmatpush3.bf16.msra.mxu0 %v1208_v30  ;;  %1229 = vmatprep.subr.bf16.mxu1 %v1212_v33 }
  0x1c   : > { %252 = vperm.xlu0 %1252, %v1443_v10   ;;  %1213 = vmatprep.subr.bf16.mxu0 %v1212_v33 }
  0x1e   : > { %1256 = vset.pattern.permute.xlu1 %v1358_v12  ;;  %1237 = vmatpush3.bf16.msra.mxu1 %v1212_v33 }
  0x1f   : > { %451 = vperm.xlu1 %1256, %v1411_v2   ;;  %1215 = vmatpush3.bf16.msra.mxu0 %v1212_v33 }
  0x20   : > { %297 = vperm.xlu0 %1252, %v1448_v11   ;;  %1230 = vmatprep.subr.bf16.mxu1 %v1216_v36 }
  0x21   : > { %1217 = vmatprep.subr.bf16.mxu0 %v1216_v36 }
  0x22   : > { %1238 = vmatpush3.bf16.msra.mxu1 %v1216_v36 }
  0x23   : > { %483 = vperm.xlu1 %1256, %v1419_v4   ;;  %1219 = vmatpush3.bf16.msra.mxu0 %v1216_v36 }
  0x24   : > { %262 = vperm.xlu0 %1252, %v1454_v13   ;;  %1231 = vmatprep.subr.bf16.mxu1 %v1220_v39 }
  0x25   : > { %1221 = vmatprep.subr.bf16.mxu0 %v1220_v39 }
  0x26   : > { %1239 = vmatpush3.bf16.msra.mxu1 %v1220_v39 }
  0x27   : > { %1257 = vset.pattern.permute.xlu1 %v1356_v0  ;;  %1223 = vmatpush3.bf16.msra.mxu0 %v1220_v39 }
  0x28   : > { %282 = vperm.xlu1 %1257, %v1459_v14   ;;  %1273 = vset.pattern.permute.xlu0 %v1357_v6 }
  0x29   : > { %350 = vperm.xlu0 %1273, %v1411_v2  }
  0x2c   : > { %1258 = vset.pattern.permute.xlu1 %v1358_v12 }
  0x2d   : > { %487 = vperm.xlu1 %1258, %v1416_v3   ;;  %386 = vperm.xlu0 %1273, %v1416_v3  }
  0x31   : > { %1259 = vset.pattern.permute.xlu1 %v1357_v6  ;;  %390 = vperm.xlu0 %1273, %v1424_v5  }
  0x32   : > { %358 = vperm.xlu1 %1259, %v1438_v9  }
  0x35   : > { %362 = vperm.xlu0 %1273, %v1430_v7  }
  0x36   : > { %1260 = vset.pattern.permute.xlu1 %v1359_v27 }
  0x37   : > { %552 = vperm.xlu1 %1260, %v1411_v2   ;;  %v1595_v2 = vld [vmem:[%s1860_s1 + $0x1] ss:$0 sm:$0xff] }
  0x39   : > { %398 = vperm.xlu0 %1273, %v1435_v8  }
  0x3b   : > { %584 = vperm.xlu1 %1260, %v1419_v4  }
  0x3d   : > { %370 = vperm.xlu0 %1273, %v1443_v10  }
  0x3f   : > { %1261 = vset.pattern.permute.xlu1 %v1357_v6 }
  0x40   : > { %394 = vperm.xlu1 %1261, %v1459_v14  }
  0x41   : > { %406 = vperm.xlu0 %1273, %v1448_v11  }
  0x44   : > { %1262 = vset.pattern.permute.xlu1 %v1359_v27 }
  0x45   : > { %588 = vperm.xlu1 %1262, %v1416_v3   ;;  %378 = vperm.xlu0 %1273, %v1454_v13  }
  0x49   : > { %1263 = vset.pattern.permute.xlu1 %v1356_v0  ;;  %1278 = vset.pattern.permute.xlu0 %v1358_v12 }
  0x4a   : > { %247 = vperm.xlu1 %1263, %v212_v40   ;;  %455 = vperm.xlu0 %1278, %v1408_v1  }
  0x4e   : > { %1264 = vset.pattern.permute.xlu1 %v1358_v12  ;;  %463 = vperm.xlu0 %1278, %v1430_v7  }
  0x4f   : > { %459 = vperm.xlu1 %1264, %v1438_v9  }
  0x52   : > { %471 = vperm.xlu0 %1278, %v1443_v10  }
  0x53   : > { %491 = vperm.xlu1 %1264, %v1424_v5  }
  0x56   : > { %507 = vperm.xlu0 %1278, %v1448_v11  }
  0x57   : > { %1265 = vset.pattern.permute.xlu1 %v1356_v0 }
  0x58   : > { %292 = vperm.xlu1 %1265, %v221_v41  }
  0x5a   : > { %1282 = vset.pattern.permute.xlu0 %v1359_v27 }
  0x5b   : > { %556 = vperm.xlu0 %1282, %v1408_v1   ;;  %v1590_v1 = vld [vmem:[%s1861_s2] ss:$0 sm:$0xff] }
  0x5c   : > { %1266 = vset.pattern.permute.xlu1 %v1358_v12 }
  0x5d   : > { %495 = vperm.xlu1 %1266, %v1459_v14  }
  0x5f   : > { %564 = vperm.xlu0 %1282, %v1430_v7  }
  0x61   : > { %1267 = vset.pattern.permute.xlu1 %v1357_v6 }
  0x62   : > { %366 = vperm.xlu1 %1267, %v212_v40  }
  0x63   : > { %572 = vperm.xlu0 %1282, %v1443_v10  }
  0x66   : > { %1268 = vset.pattern.permute.xlu1 %v1359_v27 }
  0x67   : > { %560 = vperm.xlu1 %1268, %v1438_v9   ;;  %576 = vperm.xlu0 %1282, %v214_v42  }
  0x6b   : > { %592 = vperm.xlu1 %1268, %v1424_v5   ;;  %612 = vperm.xlu0 %1282, %v223_v43  }
  0x6f   : > { %1269 = vset.pattern.permute.xlu1 %v1357_v6 }
  0x70   : > { %402 = vperm.xlu1 %1269, %v221_v41  }
  0x74   : > { %1270 = vset.pattern.permute.xlu1 %v1359_v27 }
  0x75   : > { %596 = vperm.xlu1 %1270, %v1459_v14   ;;  %v1616_v14 = vld [vmem:[%s1860_s1 + $0x3] ss:$0 sm:$0xff] }
  0x79   : > { %1271 = vset.pattern.permute.xlu1 %v1356_v0 }
  0x7a   : > { %257 = vperm.xlu1 %1271, %v214_v42  }
  0x7e   : > { %1272 = vset.pattern.permute.xlu1 %v1358_v12 }
  0x7f   : > { %467 = vperm.xlu1 %1272, %v212_v40  }
  0x83   : > { %499 = vperm.xlu1 %1272, %v1435_v8  }
  0x87   : > { %v1561_v44 = vpop.permute.xlu1 %232  ;;  %1274 = vset.pattern.permute.xlu1 %v1356_v0  ;;  %v228_v45 = vpop.permute.xlu0 %227 }
  0x88   : > { %302 = vperm.xlu1 %1274, %v223_v43   ;;  %v309_v62 = vmul.f32 %v1584_v61, %v228_v45 }
  0x8a   : > { %v332_v3 = vadd.f32 %v1590_v1, %v309_v62 }
  0x8b   : > { %v273_v46 = vpop.permute.xlu1 %272  ;;  %v268_v47 = vpop.permute.xlu0 %267 }
  0x8c   : > { %1275 = vset.pattern.permute.xlu1 %v1358_v12  ;;  %v318_v29 = vmul.f32 %v1584_v61, %v273_v46 }
  0x8d   : > { %503 = vperm.xlu1 %1275, %v221_v41  }
  0x8e   : > { %v341_v39 = vadd.f32 %v1590_v1, %v318_v29 }
  0x8f   : > { %v1565_v48 = vpop.permute.xlu0 %277 }
  0x90   : > { %v383_v49 = vpop.permute.xlu1 %382 }
  0x91   : > { %1276 = vset.pattern.permute.xlu1 %v1357_v6  ;;  %v425_v16 = vmul.f32 %v1595_v2, %v383_v49 }
  0x92   : > { %374 = vperm.xlu1 %1276, %v214_v42  }
  0x93   : > { %v1568_v50 = vpop.permute.xlu0 %242 }
  0x94   : > { %v1570_v51 = vpop.permute.xlu1 %354 }
  0x96   : > { %1277 = vset.pattern.permute.xlu1 %v1359_v27 }
  0x97   : > { %568 = vperm.xlu1 %1277, %v212_v40   ;;  %v288_v52 = vpop.permute.xlu0 %287 }
  0x98   : > { %v321_v9 = vmul.f32 %v1584_v61, %v288_v52 }
  0x99   : > { %v1573_v53 = vpop.permute.xlu1 %237 }
  0x9a   : > { %v344_v20 = vadd.f32 %v1590_v1, %v321_v9 }
  0x9b   : > { %600 = vperm.xlu1 %1277, %v1435_v8   ;;  %v253_v54 = vpop.permute.xlu0 %252  ;;  %v1608_v8 = vld [vmem:[%s1860_s1 + $0x2] ss:$0 sm:$0xff] }
  0x9c   : > { %v314_v18 = vmul.f32 %v1584_v61, %v253_v54 }
  0x9e   : > { %v452_v55 = vpop.permute.xlu1 %451  ;;  %v337_v30 = vadd.f32 %v1590_v1, %v314_v18 }
  0x9f   : > { %1279 = vset.pattern.permute.xlu1 %v1357_v6  ;;  %v298_v56 = vpop.permute.xlu0 %297  ;;  %v317_v6 = vmul.f32 %v1584_v61, %v268_v47  ;;  %v518_v17 = vmul.f32 %v1608_v8, %v452_v55 }
  0xa0   : > { %410 = vperm.xlu1 %1279, %v223_v43  }
  0xa1   : > { %v340_v15 = vadd.f32 %v1590_v1, %v317_v6 }
  0xa2   : > { %v484_v57 = vpop.permute.xlu1 %483 }
  0xa3   : > { %v263_v58 = vpop.permute.xlu0 %262  ;;  %v526_v21 = vmul.f32 %v1608_v8, %v484_v57  ;;  %v441_v25 = vadd.f32 %v425_v16, %v340_v15 }
  0xa4   : > { %1280 = vset.pattern.permute.xlu1 %v1359_v27 }
  0xa5   : > { %604 = vperm.xlu1 %1280, %v221_v41   ;;  %v542_v34 = vadd.f32 %v526_v21, %v441_v25  ;;  %v316_v41 = vmul.f32 %v1584_v61, %v263_v58 }
  0xa7   : > { %v1578_v59 = vpop.permute.xlu1 %282  ;;  %v339_v49 = vadd.f32 %v1590_v1, %v316_v41 }
  0xa8   : > { %v351_v60 = vpop.permute.xlu0 %350 }
  0xa9   : > { %1281 = vset.pattern.permute.xlu1 %v1358_v12  ;;  %v417_v4 = vmul.f32 %v1595_v2, %v351_v60 }
  0xaa   : > { %475 = vperm.xlu1 %1281, %v214_v42  }
  0xab   : > { %v433_v10 = vadd.f32 %v417_v4, %v332_v3 }
  0xac   : > { %v488_v63 = vpop.permute.xlu1 %487  ;;  %v387_v0 = vpop.permute.xlu0 %386 }
  0xad   : > { %v534_v23 = vadd.f32 %v518_v17, %v433_v10  ;;  %v426_v36 = vmul.f32 %v1595_v2, %v387_v0  ;;  %v527_v52 = vmul.f32 %v1608_v8, %v488_v63  ;;  %v310_v17 = vmul.f32 %v1584_v61, %v1561_v44 }
  0xae   : > { %479 = vperm.xlu1 %1281, %v1454_v13   ;;  %v312_v44 = vmul.f32 %v1584_v61, %v1568_v50 }
  0xaf   : > { %v442_v46 = vadd.f32 %v426_v36, %v341_v39 }
  0xb0   : > { %v1600_v5 = vpop.permute.xlu0 %390 }
  0xb1   : > { %v1603_v7 = vpop.permute.xlu1 %358  ;;  %v543_v57 = vadd.f32 %v527_v52, %v442_v46 }
  0xb2   : > { %511 = vperm.xlu1 %1281, %v223_v43   ;;  %v419_v50 = vmul.f32 %v1595_v2, %v1603_v7 }
  0xb4   : > { %v1611_v12 = vpop.permute.xlu0 %362 }
  0xb6   : > { %1283 = vset.pattern.permute.xlu1 %v1359_v27  ;;  %v553_v19 = vpop.permute.xlu1 %552  ;;  %v323_v27 = vmul.f32 %v1584_v61, %v298_v56 }
  0xb7   : > { %v619_v22 = vmul.f32 %v1616_v14, %v553_v19  ;;  %608 = vperm.xlu1 %1283, %v1448_v11   ;;  %v418_v19 = vmul.f32 %v1595_v2, %v1570_v51 }
  0xb8   : > { %v399_v24 = vpop.permute.xlu0 %398  ;;  %v346_v40 = vadd.f32 %v1590_v1, %v323_v27 }
  0xb9   : > { %v429_v26 = vmul.f32 %v1595_v2, %v399_v24  ;;  %v635_v28 = vadd.f32 %v619_v22, %v534_v23  ;;  %v333_v22 = vadd.f32 %v1590_v1, %v310_v17 }
  0xba   : > { %v585_v31 = vpop.permute.xlu1 %584 }
  0xbb   : > { %v1631_v32 = vadd.f32 %v429_v26, %v344_v20  ;;  %v627_v33 = vmul.f32 %v1616_v14, %v585_v31  ;;  %580 = vperm.xlu1 %1283, %v1454_v13   ;;  %v651_v11 = vmax.f32 %v635_v28, 0.0  ;;  %v434_v26 = vadd.f32 %v418_v19, %v333_v22 }
  0xbc   : > { %v371_v35 = vpop.permute.xlu0 %370  ;;  %v335_v31 = vadd.f32 %v1590_v1, %v312_v44 }
  0xbd   : > { %1168 = vmatprep.mubr.f32.mxu0 %v651_v11  ;;  %v422_v37 = vmul.f32 %v1595_v2, %v371_v35  ;;  %v643_v38 = vadd.f32 %v627_v33, %v542_v34  ;;  %v420_v33 = vmul.f32 %v1595_v2, %v1611_v12  ;;  %v319_v11 = vmul.f32 %v1584_v61, %v1565_v48 }
  0xbe   : > { %v311_v34 = vmul.f32 %v1584_v61, %v1573_v53  ;;  %v427_v48 = vmul.f32 %v1595_v2, %v1600_v5 }
  0xbf   : > { %v438_v42 = vadd.f32 %v422_v37, %v337_v30  ;;  %v1640_v43 = vpop.permute.xlu1 %394  ;;  %v659_v45 = vmax.f32 %v643_v38, 0.0  ;;  %v436_v38 = vadd.f32 %v420_v33, %v335_v31 }
  0xc0   : > { %v407_v13 = vpop.permute.xlu0 %406  ;;  %v334_v12 = vadd.f32 %v1590_v1, %v311_v34 }
  0xc1   : > { %1180 = vmatprep.mubr.f32.mxu1 %v659_v45  ;;  %v431_v47 = vmul.f32 %v1595_v2, %v407_v13 }
  0xc3   : > { %v447_v54 = vadd.f32 %v431_v47, %v346_v40  ;;  %v342_v40 = vadd.f32 %v1590_v1, %v319_v11 }
  0xc4   : > { %v589_v55 = vpop.permute.xlu1 %588  ;;  %v379_v56 = vpop.permute.xlu0 %378 }
  0xc5   : > { %v628_v60 = vmul.f32 %v1616_v14, %v589_v55  ;;  %v424_v58 = vmul.f32 %v1595_v2, %v379_v56  ;;  %v443_v13 = vadd.f32 %v427_v48, %v342_v40 }
  0xc7   : > { %v644_v62 = vadd.f32 %v628_v60, %v543_v57  ;;  %v1647_v0 = vadd.f32 %v424_v58, %v339_v49  ;;  %v320_v58 = vmul.f32 %v1584_v61, %v1578_v59 }
  0xc9   : > { %v660_v3 = vmax.f32 %v644_v62, 0.0  ;;  %v1649_v4 = vpop.permute.xlu1 %247  ;;  %v456_v6 = vpop.permute.xlu0 %455 }
  0xca   : > { %v519_v23 = vmul.f32 %v1608_v8, %v456_v6  ;;  %v313_v44 = vmul.f32 %v1584_v61, %v1649_v4 }
  0xcb   : > { %1181 = vmatmul.mubr.f32.vlgmr.msra.gmra.mrb[0].mxu1 %v660_v3  ;;  %v428_v3 = vmul.f32 %v1595_v2, %v1640_v43 }
  0xcc   : > { %v535_v29 = vadd.f32 %v519_v23, %v434_v26 }
  0xcd   : > { %v464_v9 = vpop.permute.xlu0 %463 }
  0xce   : > { %v460_v10 = vpop.permute.xlu1 %459  ;;  %v521_v39 = vmul.f32 %v1608_v8, %v464_v9 }
  0xcf   : > { %v520_v41 = vmul.f32 %v1608_v8, %v460_v10  ;;  %v343_v10 = vadd.f32 %v1590_v1, %v320_v58 }
  0xd0   : > { %v537_v45 = vadd.f32 %v521_v39, %v436_v38 }
  0xd1   : > { %v472_v15 = vpop.permute.xlu0 %471 }
  0xd2   : > { %v523_v63 = vmul.f32 %v1608_v8, %v472_v15  ;;  %v492_v16 = vpop.permute.xlu1 %491 }
  0xd3   : > { %v528_v47 = vmul.f32 %v1608_v8, %v492_v16 }
  0xd4   : > { %v1654_v18 = vadd.f32 %v523_v63, %v438_v42  ;;  %v435_v42 = vadd.f32 %v419_v50, %v334_v12  ;;  %v444_v63 = vadd.f32 %v428_v3, %v343_v10 }
  0xd5   : > { %v508_v20 = vpop.permute.xlu0 %507  ;;  %v544_v56 = vadd.f32 %v528_v47, %v443_v13 }
  0xd6   : > { %v532_v21 = vmul.f32 %v1608_v8, %v508_v20  ;;  %v536_v46 = vadd.f32 %v520_v41, %v435_v42 }
  0xd7   : > { %v1661_v24 = vpop.permute.xlu1 %292 }
  0xd8   : > { %v1663_v25 = vadd.f32 %v532_v21, %v447_v54  ;;  %v322_v48 = vmul.f32 %v1584_v61, %v1661_v24 }
  0xda   : > { %v557_v28 = vpop.permute.xlu0 %556 }
  0xdb   : > { %v620_v30 = vmul.f32 %v1616_v14, %v557_v28 }
  0xdc   : > { %v496_v51 = vpop.permute.xlu1 %495 }
  0xdd   : > { %v636_v27 = vadd.f32 %v620_v30, %v535_v29  ;;  %v529_v15 = vmul.f32 %v1608_v8, %v496_v51  ;;  %v336_v51 = vadd.f32 %v1590_v1, %v313_v44 }
  0xde   : > { %v565_v36 = vpop.permute.xlu0 %564 }
  0xdf   : > { %v652_v35 = vmax.f32 %v636_v27, 0.0  ;;  %v622_v53 = vmul.f32 %v1616_v14, %v565_v36  ;;  %v545_v17 = vadd.f32 %v529_v15, %v444_v63 }
  0xe1   : > { %v367_v37 = vpop.permute.xlu1 %366  ;;  %1169 = vmatmul.mubr.f32.vlgmr.msra.gmra.mrb[0].mxu0 %v652_v35  ;;  %v638_v52 = vadd.f32 %v622_v53, %v537_v45 }
  0xe2   : > { %v421_v28 = vmul.f32 %v1595_v2, %v367_v37  ;;  %v573_v29 = vpop.permute.xlu0 %572 }
  0xe3   : > { %v654_v60 = vmax.f32 %v638_v52, 0.0  ;;  %v624_v31 = vmul.f32 %v1616_v14, %v573_v29 }
  0xe4   : > { %v437_v33 = vadd.f32 %v421_v28, %v336_v51 }
  0xe5   : > { %v640_v36 = vadd.f32 %v624_v31, %v1654_v18  ;;  %v345_v18 = vadd.f32 %v1590_v1, %v322_v48 }
  0xe6   : > { %v561_v7 = vpop.permute.xlu1 %560 }
  0xe7   : > { %v621_v49 = vmul.f32 %v1616_v14, %v561_v7  ;;  %v656_v12 = vmax.f32 %v640_v36, 0.0 }
  0xe9   : > { %v637_v54 = vadd.f32 %v621_v49, %v536_v46 }
  0xea   : > { %v593_v55 = vpop.permute.xlu1 %592 }
  0xeb   : > { %v653_v57 = vmax.f32 %v637_v54, 0.0  ;;  %v629_v5 = vmul.f32 %v1616_v14, %v593_v55 }
  0xed   : > { %v645_v62 = vadd.f32 %v629_v5, %v544_v56  ;;  %1171 = vmatprep.mubr.f32.mxu0 %v653_v57 }
  0xee   : > { %1172 = vmatmul.mubr.f32.gmra.mrb[2].mxu0 %v654_v60  ;;  %v577_v60 = vpop.permute.xlu0 %576 }
  0xef   : > { %v661_v6 = vmax.f32 %v645_v62, 0.0  ;;  %v403_v9 = vpop.permute.xlu1 %402  ;;  %v625_v62 = vmul.f32 %v1616_v14, %v577_v60 }
  0xf0   : > { %v430_v53 = vmul.f32 %v1595_v2, %v403_v9 }
  0xf1   : > { %1183 = vmatprep.mubr.f32.mxu1 %v661_v6 }
  0xf4   : > { %v597_v16 = vpop.permute.xlu1 %596 }
  0xf5   : > { %v630_v19 = vmul.f32 %v1616_v14, %v597_v16 }
  0xf7   : > { %v646_v20 = vadd.f32 %v630_v19, %v545_v17 }
  0xf9   : > { %v662_v59 = vmax.f32 %v646_v20, 0.0  ;;  %v258_v21 = vpop.permute.xlu1 %257  ;;  %v613_v20 = vpop.permute.xlu0 %612 }
  0xfa   : > { %v315_v13 = vmul.f32 %v1584_v61, %v258_v21  ;;  %v634_v21 = vmul.f32 %v1616_v14, %v613_v20 }
  0xfb   : > { %1184 = vmatmul.mubr.f32.gmra.mrb[2].mxu1 %v662_v59 }
  0xfc   : > { %v338_v54 = vadd.f32 %v1590_v1, %v315_v13 }
  0xfe   : > { %v468_v22 = vpop.permute.xlu1 %467 }
  0xff   : > { %v522_v27 = vmul.f32 %v1608_v8, %v468_v22 }
 0x101   : > { %v538_v34 = vadd.f32 %v522_v27, %v437_v33 }
 0x102   : > { %v500_v23 = vpop.permute.xlu1 %499 }
 0x103   : > { %v530_v35 = vmul.f32 %v1608_v8, %v500_v23 }
 0x105   : > { %v546_v37 = vadd.f32 %v530_v35, %v1631_v32  ;;  %v446_v32 = vadd.f32 %v430_v53, %v345_v18 }
 0x107   : > { %v303_v26 = vpop.permute.xlu1 %302 }
 0x108   : > { %v324_v58 = vmul.f32 %v1584_v61, %v303_v26 }
 0x10a   : > { %v347_v15 = vadd.f32 %v1590_v1, %v324_v58 }
 0x10c   : > { %v504_v43 = vpop.permute.xlu1 %503 }
 0x10d   : > { %v531_v7 = vmul.f32 %v1608_v8, %v504_v43 }
 0x10f   : > { %v547_v47 = vadd.f32 %v531_v7, %v446_v32 }
 0x111   : > { %v375_v30 = vpop.permute.xlu1 %374 }
 0x112   : > { %v423_v24 = vmul.f32 %v1595_v2, %v375_v30 }
 0x114   : > { %v439_v57 = vadd.f32 %v423_v24, %v338_v54 }
 0x116   : > { %v569_v11 = vpop.permute.xlu1 %568 }
 0x117   : > { %v623_v50 = vmul.f32 %v1616_v14, %v569_v11 }
 0x119   : > { %v639_v4 = vadd.f32 %v623_v50, %v538_v34 }
 0x11a   : > { %v601_v38 = vpop.permute.xlu1 %600 }
 0x11b   : > { %v655_v39 = vmax.f32 %v639_v4, 0.0  ;;  %v631_v40 = vmul.f32 %v1616_v14, %v601_v38 }
 0x11d   : > { %v647_v41 = vadd.f32 %v631_v40, %v546_v37  ;;  %1174 = vmatprep.mubr.f32.mxu0 %v655_v39 }
 0x11e   : > { %1175 = vmatmul.mubr.f32.gmra.mrb[4].mxu0 %v656_v12 }
 0x11f   : > { %v663_v42 = vmax.f32 %v647_v41, 0.0  ;;  %v411_v45 = vpop.permute.xlu1 %410 }
 0x120   : > { %v432_v9 = vmul.f32 %v1595_v2, %v411_v45 }
 0x121   : > { %1186 = vmatprep.mubr.f32.mxu1 %v663_v42 }
 0x122   : > { %v448_v17 = vadd.f32 %v432_v9, %v347_v15 }
 0x124   : > { %v605_v46 = vpop.permute.xlu1 %604 }
 0x125   : > { %v632_v49 = vmul.f32 %v1616_v14, %v605_v46 }
 0x127   : > { %v648_v52 = vadd.f32 %v632_v49, %v547_v47 }
 0x129   : > { %v664_v55 = vmax.f32 %v648_v52, 0.0  ;;  %v476_v56 = vpop.permute.xlu1 %475 }
 0x12a   : > { %v524_v5 = vmul.f32 %v1608_v8, %v476_v56 }
 0x12b   : > { %1187 = vmatmul.mubr.f32.gmra.mrb[4].mxu1 %v664_v55 }
 0x12c   : > { %v540_v3 = vadd.f32 %v524_v5, %v439_v57 }
 0x12d   : > { %v480_v6 = vpop.permute.xlu1 %479 }
 0x12e   : > { %v641_v10 = vadd.f32 %v625_v62, %v540_v3  ;;  %v525_v22 = vmul.f32 %v1608_v8, %v480_v6 }
 0x130   : > { %v657_v63 = vmax.f32 %v641_v10, 0.0  ;;  %v541_v1 = vadd.f32 %v525_v22, %v1647_v0 }
 0x131   : > { %v512_v16 = vpop.permute.xlu1 %511 }
 0x132   : > { %v533_v19 = vmul.f32 %v1608_v8, %v512_v16  ;;  %1177 = vmatprep.mubr.f32.mxu0 %v657_v63  ;;  %v1101_v8 = vld [vmem:[%s1863_s4] ss:$0 sm:$0xff] }
 0x134   : > { %v549_v59 = vadd.f32 %v533_v19, %v448_v17 }
 0x136   : > { %v609_v61 = vpop.permute.xlu1 %608  ;;  %v650_v26 = vadd.f32 %v634_v21, %v549_v59 }
 0x137   : > { %v633_v23 = vmul.f32 %v1616_v14, %v609_v61 }
 0x138   : > { %v666_v29 = vmax.f32 %v650_v26, 0.0 }
 0x139   : > { %v649_v2 = vadd.f32 %v633_v23, %v1663_v25 }
 0x13a   : > { %v581_v43 = vpop.permute.xlu1 %580 }
 0x13b   : > { %v665_v44 = vmax.f32 %v649_v2, 0.0  ;;  %v626_v28 = vmul.f32 %v1616_v14, %v581_v43 }
 0x13d   : > { %v642_v30 = vadd.f32 %v626_v28, %v541_v1  ;;  %1189 = vmatprep.mubr.f32.mxu1 %v665_v44 }
 0x13e   : > { %1190 = vmatmul.mubr.f32.gmra.mrb[6].mxu1 %v666_v29 }
 0x13f   : > { %v658_v51 = vmax.f32 %v642_v30, 0.0 }
 0x141   : > { %1178 = vmatmul.mubr.f32.gmra.mrb[6].mxu0 %v658_v51 }
 0x19e   : > { %v1182_v27 = vpop.f32.mrb[0].mxu1 }
 0x19f   : > { %v802_v31 = vadd.f32 %v1182_v27, %v1101_v8  ;;  %v796_v33 = vpop.f32.mrb[1].mxu1 }
 0x1a0   : > { %v797_v14 = vadd.f32 %v1101_v8, %v796_v33 }
 0x1a1   : > { %853 = vmax.xlane.f32.xlu1 %v802_v31 }
 0x1b4   : > { %v1170_v25 = vpop.f32.mrb[0].mxu0 }
 0x1b5   : > { %v762_v11 = vadd.f32 %v1170_v25, %v1101_v8  ;;  %v756_v0 = vpop.f32.mrb[1].mxu0 }
 0x1b6   : > { %v757_v34 = vadd.f32 %v1101_v8, %v756_v0 }
 0x1b7   : > { %837 = vmax.xlane.f32.xlu0 %v762_v11 }
 0x1b8   : > { %835 = vmax.xlane.f32.xlu1 %v757_v34 }
 0x1bb   : > { %851 = vmax.xlane.f32.xlu0 %v797_v14 }
 0x1c1   : > { %v1173_v35 = vpop.f32.mrb[2].mxu0 }
 0x1c2   : > { %v772_v50 = vadd.f32 %v1173_v35, %v1101_v8  ;;  %v766_v36 = vpop.f32.mrb[3].mxu0 }
 0x1c3   : > { %v767_v4 = vadd.f32 %v1101_v8, %v766_v36 }
 0x1c4   : > { %841 = vmax.xlane.f32.xlu1 %v772_v50 }
 0x1c5   : > { %839 = vmax.xlane.f32.xlu0 %v767_v4 }
 0x1ce   : > { %v1185_v38 = vpop.f32.mrb[2].mxu1 }
 0x1cf   : > { %v1729_v37 = vadd.f32 %v1185_v38, %v1101_v8  ;;  %v806_v39 = vpop.f32.mrb[3].mxu1 }
 0x1d0   : > { %v1731_v40 = vadd.f32 %v1101_v8, %v806_v39 }
 0x1d1   : > { %857 = vmax.xlane.f32.xlu1 %v1729_v37 }
 0x1d2   : > { %855 = vmax.xlane.f32.xlu0 %v1731_v40 }
 0x1f1   : > { %v1176_v12 = vpop.f32.mrb[4].mxu0 }
 0x1f2   : > { %v1735_v48 = vadd.f32 %v1176_v12, %v1101_v8  ;;  %v776_v41 = vpop.f32.mrb[5].mxu0 }
 0x1f3   : > { %v1737_v53 = vadd.f32 %v1101_v8, %v776_v41 }
 0x1f4   : > { %845 = vmax.xlane.f32.xlu1 %v1735_v48 }
 0x1f5   : > { %843 = vmax.xlane.f32.xlu0 %v1737_v53 }
 0x1fe   : > { %v1188_v42 = vpop.f32.mrb[4].mxu1 }
 0x1ff   : > { %v1741_v45 = vadd.f32 %v1188_v42, %v1101_v8  ;;  %v816_v18 = vpop.f32.mrb[5].mxu1 }
 0x200   : > { %v1743_v7 = vadd.f32 %v1101_v8, %v816_v18 }
 0x201   : > { %861 = vmax.xlane.f32.xlu1 %v1741_v45 }
 0x202   : > { %859 = vmax.xlane.f32.xlu0 %v1743_v7 }
 0x211   : > { %v1191_v32 = vpop.f32.mrb[6].mxu1 }
 0x212   : > { %v826_v13 = vpop.f32.mrb[7].mxu1  ;;  %v1753_v52 = vadd.f32 %v1191_v32, %v1101_v8 }
 0x213   : > { %v1755_v54 = vadd.f32 %v1101_v8, %v826_v13 }
 0x214   : > { %v1179_v46 = vpop.f32.mrb[6].mxu0 }
 0x215   : > { %v1747_v47 = vadd.f32 %v1179_v46, %v1101_v8  ;;  %v786_v49 = vpop.f32.mrb[7].mxu0 }
 0x216   : > { %v1749_v24 = vadd.f32 %v1101_v8, %v786_v49 }
 0x217   : > { %849 = vmax.xlane.f32.xlu1 %v1747_v47 }
 0x218   : > { %847 = vmax.xlane.f32.xlu0 %v1749_v24 }
 0x21b   : > { %865 = vmax.xlane.f32.xlu1 %v1753_v52 }
 0x21c   : > { %863 = vmax.xlane.f32.xlu0 %v1755_v54 }
 0x22e   : > { %v854_v55 = vpop.xlane.xlu1 %853 }
 0x22f   : > { %v876_v56 = vsub.f32 %v802_v31, %v854_v55 }
 0x231   : > { %v901_v3 = vmul.f32 1.442695, %v876_v56 }
 0x244   : > { %v838_v57 = vpop.xlane.xlu0 %837 }
 0x245   : > { %v868_v5 = vsub.f32 %v762_v11, %v838_v57  ;;  %v836_v60 = vpop.xlane.xlu1 %835 }
 0x246   : > { %v867_v58 = vsub.f32 %v757_v34, %v836_v60 }
 0x247   : > { %v885_v62 = vmul.f32 1.442695, %v868_v5 }
 0x248   : > { %v883_v6 = vmul.f32 1.442695, %v867_v58  ;;  %v852_v9 = vpop.xlane.xlu0 %851 }
 0x249   : > { %1284 = vpow2.f32 %v885_v62  ;;  %v875_v10 = vsub.f32 %v797_v14, %v852_v9 }
 0x24a   : > { %1286 = vpow2.f32 %v883_v6 }
 0x24b   : > { %v899_v15 = vmul.f32 1.442695, %v875_v10  ;;  %1288 = vpow2.f32 %v901_v3 }
 0x24d   : > { %1290 = vpow2.f32 %v899_v15 }
 0x251   : > { %v842_v63 = vpop.xlane.xlu1 %841 }
 0x252   : > { %v870_v16 = vsub.f32 %v772_v50, %v842_v63  ;;  %v840_v17 = vpop.xlane.xlu0 %839 }
 0x253   : > { %v1759_v19 = vpop.eup %1284  ;;  %v869_v20 = vsub.f32 %v767_v4, %v840_v17 }
 0x254   : > { %v1761_v59 = vpop.eup %1286  ;;  %v889_v21 = vmul.f32 1.442695, %v870_v16  ;;  %917 = vadd.xlane.f32.xlu1 %v1759_v19 }
 0x255   : > { %v887_v61 = vmul.f32 1.442695, %v869_v20  ;;  %915 = vadd.xlane.f32.xlu0 %v1761_v59  ;;  %v1765_v22 = vpop.eup %1288 }
 0x256   : > { %1292 = vpow2.f32 %v889_v21 }
 0x257   : > { %v1767_v23 = vpop.eup %1290  ;;  %1294 = vpow2.f32 %v887_v61 }
 0x258   : > { %933 = vadd.xlane.f32.xlu1 %v1765_v22 }
 0x259   : > { %931 = vadd.xlane.f32.xlu0 %v1767_v23 }
 0x25e   : > { %v858_v26 = vpop.xlane.xlu1 %857 }
 0x25f   : > { %v878_v2 = vsub.f32 %v1729_v37, %v858_v26  ;;  %v856_v43 = vpop.xlane.xlu0 %855 }
 0x260   : > { %v1772_v1 = vpop.eup %1292  ;;  %v877_v44 = vsub.f32 %v1731_v40, %v856_v43 }
 0x261   : > { %v1775_v28 = vpop.eup %1294  ;;  %v905_v29 = vmul.f32 1.442695, %v878_v2  ;;  %921 = vadd.xlane.f32.xlu1 %v1772_v1 }
 0x262   : > { %v903_v30 = vmul.f32 1.442695, %v877_v44  ;;  %919 = vadd.xlane.f32.xlu0 %v1775_v28 }
 0x263   : > { %1296 = vpow2.f32 %v905_v29 }
 0x264   : > { %1298 = vpow2.f32 %v903_v30 }
 0x26d   : > { %v1779_v51 = vpop.eup %1296 }
 0x26e   : > { %v1781_v8 = vpop.eup %1298  ;;  %937 = vadd.xlane.f32.xlu1 %v1779_v51 }
 0x26f   : > { %935 = vadd.xlane.f32.xlu0 %v1781_v8 }
 0x281   : > { %v846_v27 = vpop.xlane.xlu1 %845 }
 0x282   : > { %v872_v31 = vsub.f32 %v1735_v48, %v846_v27  ;;  %v844_v33 = vpop.xlane.xlu0 %843 }
 0x283   : > { %v871_v25 = vsub.f32 %v1737_v53, %v844_v33 }
 0x284   : > { %v893_v11 = vmul.f32 1.442695, %v872_v31 }
 0x285   : > { %v891_v0 = vmul.f32 1.442695, %v871_v25 }
 0x286   : > { %1300 = vpow2.f32 %v893_v11 }
 0x287   : > { %1302 = vpow2.f32 %v891_v0 }
 0x28e   : > { %v862_v34 = vpop.xlane.xlu1 %861 }
 0x28f   : > { %v880_v14 = vsub.f32 %v1741_v45, %v862_v34  ;;  %v860_v35 = vpop.xlane.xlu0 %859 }
 0x290   : > { %v1788_v50 = vpop.eup %1300  ;;  %v879_v36 = vsub.f32 %v1743_v7, %v860_v35 }
 0x291   : > { %v1791_v4 = vpop.eup %1302  ;;  %v909_v38 = vmul.f32 1.442695, %v880_v14  ;;  %925 = vadd.xlane.f32.xlu1 %v1788_v50 }
 0x292   : > { %v907_v37 = vmul.f32 1.442695, %v879_v36  ;;  %923 = vadd.xlane.f32.xlu0 %v1791_v4 }
 0x293   : > { %1304 = vpow2.f32 %v909_v38 }
 0x294   : > { %1306 = vpow2.f32 %v907_v37 }
 0x29d   : > { %v1795_v39 = vpop.eup %1304 }
 0x29e   : > { %v1797_v40 = vpop.eup %1306  ;;  %941 = vadd.xlane.f32.xlu1 %v1795_v39 }
 0x29f   : > { %939 = vadd.xlane.f32.xlu0 %v1797_v40 }
 0x2a4   : > { %v850_v12 = vpop.xlane.xlu1 %849 }
 0x2a5   : > { %v874_v48 = vsub.f32 %v1747_v47, %v850_v12  ;;  %v848_v41 = vpop.xlane.xlu0 %847 }
 0x2a6   : > { %v873_v53 = vsub.f32 %v1749_v24, %v848_v41 }
 0x2a7   : > { %v897_v42 = vmul.f32 1.442695, %v874_v48 }
 0x2a8   : > { %v895_v45 = vmul.f32 1.442695, %v873_v53  ;;  %v866_v18 = vpop.xlane.xlu1 %865 }
 0x2a9   : > { %1308 = vpow2.f32 %v897_v42  ;;  %v882_v7 = vsub.f32 %v1753_v52, %v866_v18  ;;  %v864_v32 = vpop.xlane.xlu0 %863 }
 0x2aa   : > { %1310 = vpow2.f32 %v895_v45  ;;  %v881_v13 = vsub.f32 %v1755_v54, %v864_v32 }
 0x2ab   : > { %v913_v46 = vmul.f32 1.442695, %v882_v7 }
 0x2ac   : > { %v911_v49 = vmul.f32 1.442695, %v881_v13 }
 0x2ad   : > { %1312 = vpow2.f32 %v913_v46 }
 0x2ae   : > { %1314 = vpow2.f32 %v911_v49 }
 0x2b3   : > { %v1805_v55 = vpop.eup %1308 }
 0x2b4   : > { %v1807_v47 = vpop.eup %1310  ;;  %929 = vadd.xlane.f32.xlu1 %v1805_v55 }
 0x2b5   : > { %927 = vadd.xlane.f32.xlu0 %v1807_v47 }
 0x2b7   : > { %v1811_v24 = vpop.eup %1312 }
 0x2b8   : > { %v1813_v52 = vpop.eup %1314  ;;  %945 = vadd.xlane.f32.xlu1 %v1811_v24 }
 0x2b9   : > { %943 = vadd.xlane.f32.xlu0 %v1813_v52 }
 0x2e1   : > { %v918_v54 = vpop.xlane.xlu1 %917 }
 0x2e2   : > { %1316 = vrcp.f32 %v918_v54  ;;  %v916_v56 = vpop.xlane.xlu0 %915 }
 0x2e3   : > { %1318 = vrcp.f32 %v916_v56 }
 0x2e5   : > { %v934_v57 = vpop.xlane.xlu1 %933 }
 0x2e6   : > { %1320 = vrcp.f32 %v934_v57  ;;  %v932_v5 = vpop.xlane.xlu0 %931 }
 0x2e7   : > { %1322 = vrcp.f32 %v932_v5 }
 0x2ec   : > { %v1317_v60 = vpop.eup %1316 }
 0x2ed   : > { %v1319_v58 = vpop.eup %1318  ;;  %v964_v62 = vmul.f32 %v1317_v60, %v918_v54 }
 0x2ee   : > { %v963_v3 = vmul.f32 %v1319_v58, %v916_v56  ;;  %v922_v6 = vpop.xlane.xlu1 %921 }
 0x2ef   : > { %v980_v9 = vsub.f32 2.0, %v964_v62  ;;  %1324 = vrcp.f32 %v922_v6  ;;  %v920_v10 = vpop.xlane.xlu0 %919 }
 0x2f0   : > { %v1321_v15 = vpop.eup %1320  ;;  %v979_v63 = vsub.f32 2.0, %v963_v3  ;;  %1326 = vrcp.f32 %v920_v10 }
 0x2f1   : > { %v1323_v16 = vpop.eup %1322  ;;  %v996_v17 = vmul.f32 %v1317_v60, %v980_v9  ;;  %v972_v20 = vmul.f32 %v1321_v15, %v934_v57 }
 0x2f2   : > { %v995_v21 = vmul.f32 %v1319_v58, %v979_v63  ;;  %v971_v61 = vmul.f32 %v1323_v16, %v932_v5 }
 0x2f3   : > { %v1012_v26 = vmul.f32 %v1759_v19, %v996_v17  ;;  %v988_v2 = vsub.f32 2.0, %v972_v20 }
 0x2f4   : > { %v1011_v43 = vmul.f32 %v1761_v59, %v995_v21  ;;  %v987_v44 = vsub.f32 2.0, %v971_v61 }
 0x2f5   : > { %1028 = vst [vmem:[%s1822_s26 + $0x8] sm:$0xff] %v1012_v26  ;;  %v1004_v29 = vmul.f32 %v1321_v15, %v988_v2 }
 0x2f6   : > { %1027 = vst [vmem:[%s1822_s26] sm:$0xff] %v1011_v43  ;;  %v1003_v30 = vmul.f32 %v1323_v16, %v987_v44 }
 0x2f7   : > { %v1020_v27 = vmul.f32 %v1765_v22, %v1004_v29 }
 0x2f8   : > { %v1019_v31 = vmul.f32 %v1767_v23, %v1003_v30 }
 0x2f9   : > { %v1325_v33 = vpop.eup %1324  ;;  %1036 = vst [vmem:[%s1822_s26 + $0x48] sm:$0xff] %v1020_v27 }
 0x2fa   : > { %v1327_v25 = vpop.eup %1326  ;;  %1035 = vst [vmem:[%s1822_s26 + $0x40] sm:$0xff] %v1019_v31  ;;  %v966_v11 = vmul.f32 %v1325_v33, %v922_v6 }
 0x2fb   : > { %v965_v19 = vmul.f32 %v1327_v25, %v920_v10  ;;  %v938_v0 = vpop.xlane.xlu1 %937 }
 0x2fc   : > { %v982_v34 = vsub.f32 2.0, %v966_v11  ;;  %1328 = vrcp.f32 %v938_v0  ;;  %v936_v59 = vpop.xlane.xlu0 %935 }
 0x2fd   : > { %v981_v14 = vsub.f32 2.0, %v965_v19  ;;  %1330 = vrcp.f32 %v936_v59 }
 0x2fe   : > { %v998_v35 = vmul.f32 %v1325_v33, %v982_v34 }
 0x2ff   : > { %v997_v36 = vmul.f32 %v1327_v25, %v981_v14 }
 0x300   : > { %v1014_v22 = vmul.f32 %v1772_v1, %v998_v35 }
 0x301   : > { %v1013_v23 = vmul.f32 %v1775_v28, %v997_v36 }
 0x302   : > { %1030 = vst [vmem:[%s1822_s26 + $0x18] sm:$0xff] %v1014_v22 }
 0x303   : > { %1029 = vst [vmem:[%s1822_s26 + $0x10] sm:$0xff] %v1013_v23 }
 0x306   : > { %v1329_v38 = vpop.eup %1328 }
 0x307   : > { %v1331_v37 = vpop.eup %1330  ;;  %v974_v12 = vmul.f32 %v1329_v38, %v938_v0 }
 0x308   : > { %v973_v48 = vmul.f32 %v1331_v37, %v936_v59 }
 0x309   : > { %v990_v41 = vsub.f32 2.0, %v974_v12 }
 0x30a   : > { %v989_v53 = vsub.f32 2.0, %v973_v48 }
 0x30b   : > { %v1006_v42 = vmul.f32 %v1329_v38, %v990_v41 }
 0x30c   : > { %v1005_v45 = vmul.f32 %v1331_v37, %v989_v53 }
 0x30d   : > { %v1022_v18 = vmul.f32 %v1779_v51, %v1006_v42 }
 0x30e   : > { %v1021_v7 = vmul.f32 %v1781_v8, %v1005_v45 }
 0x30f   : > { %1038 = vst [vmem:[%s1822_s26 + $0x58] sm:$0xff] %v1022_v18 }
 0x310   : > { %1037 = vst [vmem:[%s1822_s26 + $0x50] sm:$0xff] %v1021_v7 }
 0x31e   : > { %v926_v32 = vpop.xlane.xlu1 %925 }
 0x31f   : > { %1332 = vrcp.f32 %v926_v32  ;;  %v924_v1 = vpop.xlane.xlu0 %923 }
 0x320   : > { %1334 = vrcp.f32 %v924_v1 }
 0x329   : > { %v1333_v28 = vpop.eup %1332 }
 0x32a   : > { %v1335_v13 = vpop.eup %1334  ;;  %v968_v46 = vmul.f32 %v1333_v28, %v926_v32 }
 0x32b   : > { %v967_v49 = vmul.f32 %v1335_v13, %v924_v1  ;;  %v942_v54 = vpop.xlane.xlu1 %941 }
 0x32c   : > { %v984_v56 = vsub.f32 2.0, %v968_v46  ;;  %1336 = vrcp.f32 %v942_v54  ;;  %v940_v57 = vpop.xlane.xlu0 %939 }
 0x32d   : > { %v983_v5 = vsub.f32 2.0, %v967_v49  ;;  %1338 = vrcp.f32 %v940_v57 }
 0x32e   : > { %v1000_v51 = vmul.f32 %v1333_v28, %v984_v56 }
 0x32f   : > { %v999_v8 = vmul.f32 %v1335_v13, %v983_v5 }
 0x330   : > { %v1016_v60 = vmul.f32 %v1788_v50, %v1000_v51 }
 0x331   : > { %v1015_v58 = vmul.f32 %v1791_v4, %v999_v8 }
 0x332   : > { %1032 = vst [vmem:[%s1822_s26 + $0x28] sm:$0xff] %v1016_v60 }
 0x333   : > { %1031 = vst [vmem:[%s1822_s26 + $0x20] sm:$0xff] %v1015_v58 }
 0x336   : > { %v1337_v62 = vpop.eup %1336 }
 0x337   : > { %v1339_v3 = vpop.eup %1338  ;;  %v976_v6 = vmul.f32 %v1337_v62, %v942_v54 }
 0x338   : > { %v975_v9 = vmul.f32 %v1339_v3, %v940_v57 }
 0x339   : > { %v992_v10 = vsub.f32 2.0, %v976_v6 }
 0x33a   : > { %v991_v15 = vsub.f32 2.0, %v975_v9 }
 0x33b   : > { %v1008_v63 = vmul.f32 %v1337_v62, %v992_v10 }
 0x33c   : > { %v1007_v16 = vmul.f32 %v1339_v3, %v991_v15 }
 0x33d   : > { %v1024_v17 = vmul.f32 %v1795_v39, %v1008_v63 }
 0x33e   : > { %v1023_v20 = vmul.f32 %v1797_v40, %v1007_v16 }
 0x33f   : > { %1040 = vst [vmem:[%s1822_s26 + $0x68] sm:$0xff] %v1024_v17 }
 0x340   : > { %1039 = vst [vmem:[%s1822_s26 + $0x60] sm:$0xff] %v1023_v20 }
 0x341   : > { %v930_v21 = vpop.xlane.xlu1 %929 }
 0x342   : > { %1340 = vrcp.f32 %v930_v21  ;;  %v928_v50 = vpop.xlane.xlu0 %927 }
 0x343   : > { %1342 = vrcp.f32 %v928_v50 }
 0x345   : > { %v946_v4 = vpop.xlane.xlu1 %945 }
 0x346   : > { %1344 = vrcp.f32 %v946_v4  ;;  %v944_v61 = vpop.xlane.xlu0 %943 }
 0x347   : > { %1346 = vrcp.f32 %v944_v61 }
 0x34c   : > { %v1341_v26 = vpop.eup %1340 }
 0x34d   : > { %v1343_v2 = vpop.eup %1342  ;;  %v970_v43 = vmul.f32 %v1341_v26, %v930_v21 }
 0x34e   : > { %v969_v44 = vmul.f32 %v1343_v2, %v928_v50 }
 0x34f   : > { %v986_v29 = vsub.f32 2.0, %v970_v43 }
 0x350   : > { %v1345_v39 = vpop.eup %1344  ;;  %v985_v30 = vsub.f32 2.0, %v969_v44 }
 0x351   : > { %v1347_v40 = vpop.eup %1346  ;;  %v1002_v27 = vmul.f32 %v1341_v26, %v986_v29  ;;  %v978_v31 = vmul.f32 %v1345_v39, %v946_v4 }
 0x352   : > { %v1001_v33 = vmul.f32 %v1343_v2, %v985_v30  ;;  %v977_v25 = vmul.f32 %v1347_v40, %v944_v61 }
 0x353   : > { %v1018_v11 = vmul.f32 %v1805_v55, %v1002_v27  ;;  %v994_v19 = vsub.f32 2.0, %v978_v31 }
 0x354   : > { %v1017_v0 = vmul.f32 %v1807_v47, %v1001_v33  ;;  %v993_v34 = vsub.f32 2.0, %v977_v25 }
 0x355   : > { %1034 = vst [vmem:[%s1822_s26 + $0x38] sm:$0xff] %v1018_v11  ;;  %v1010_v59 = vmul.f32 %v1345_v39, %v994_v19 }
 0x356   : > { %1033 = vst [vmem:[%s1822_s26 + $0x30] sm:$0xff] %v1017_v0  ;;  %v1009_v14 = vmul.f32 %v1347_v40, %v993_v34 }
 0x357   : > { %v1026_v35 = vmul.f32 %v1811_v24, %v1010_v59 }
 0x358   : > { %v1025_v36 = vmul.f32 %v1813_v52, %v1009_v14 }
 0x359   : > { %1042 = vst [vmem:[%s1822_s26 + $0x78] sm:$0xff] %v1026_v35 }
 0x35a   : > { %1041 = vst [vmem:[%s1822_s26 + $0x70] sm:$0xff] %v1025_v36 }
 0x35b PF: > { %s15_s18 = sadd.s32 1, %s1354_s18  }
 0x35c   : > { %p12_p4 = scmp.ge.s32.totalorder %s15_s18, 4  }
 0x35e   :  { %14 = sbr.rel (!%p12_p4) target bundleno = 1 (0x1), region = 68 }

</bundles_post_ra>
